<compile_context>
chip_gen: v7x
topology: tpu7x:2x2x1
jax: 0.10.0
libtpu: 0.0.40
codegen_flags: <defaults>
</compile_context>

<pallas_src>
import numpy as np
import jax
import jax.numpy as jnp
from jax.experimental import pallas as pl
from jax.experimental.pallas import tpu as pltpu


P = 4        # batch rows packed into each lane group ("batch-in-lanes")
PW = 4       # per-row p-feature width: [p1, p2, p3, 0] so P*PW is 8-aligned
ALIGN = 16   # sublane alignment safe for both f32 and bf16 tiling


def _round_up(n, m):
    return (n + m - 1) // m * m


def _cdiv(a, b):
    return -(-a // b)


def _block_diag(block, p):
    r, c = block.shape
    out = np.zeros((p * r, p * c), block.dtype)
    for g in range(p):
        out[g * r:(g + 1) * r, g * c:(g + 1) * c] = block
    return out


def _make_layout(inlen):
    """Row offsets of each block-diagonal weight inside the packed bf16 slab."""
    offs = {}
    r = 0

    def add(name, rows):
        nonlocal r
        offs[name] = r
        r = _round_up(r + rows, ALIGN)

    add("w0", P * 2 * inlen)   # block-diag fc0 weight    (P*2*inlen, P*inlen)
    add("w1o", P * inlen)      # block-diag fc1 (out1)    (P*inlen,  P*18)
    add("w1p", P * PW)         # block-diag fc1 (p-part)  (P*PW,     P*18), p2/50 folded
    add("w2", P * 18)          # (P*18, P*18)
    add("w3", P * 18)          # (P*18, P*18)
    add("w4", P * 18)          # block-diag fc4 (column)  (P*18, P)
    width = P * max(inlen, 18)
    return offs, _round_up(r, ALIGN), width


def init_params(key, inlen):
    """PyTorch nn.Linear-style init: U(-1/sqrt(fan_in), 1/sqrt(fan_in))."""
    def linear(k, out_f, in_f):
        kw, kb = jax.random.split(k)
        bound = 1.0 / float(np.sqrt(in_f))
        w = jax.random.uniform(kw, (out_f, in_f), jnp.float32, -bound, bound)
        b = jax.random.uniform(kb, (out_f,), jnp.float32, -bound, bound)
        return w, b

    k0, k1, k2, k3, k4 = jax.random.split(key, 5)
    w0, b0 = linear(k0, inlen, 2 * inlen)   # fc0
    w1, b1 = linear(k1, 18, inlen + 3)      # fc1
    w2, b2 = linear(k2, 18, 18)             # fc2
    w3, b3 = linear(k3, 18, 18)             # fc3
    w4, b4 = linear(k4, 1, 18)              # fc4
    return dict(w0=w0, b0=b0, w1=w1, b1=b1, w2=w2, b2=b2,
                w3=w3, b3=b3, w4=w4, b4=b4)


def pack_params(params, inlen):
    """Pack weights into one block-diagonal bf16 slab and biases into an f32 slab.

    NOTE: uses host-side numpy -> must be called with concrete arrays (not under jit).
    """
    offs, rows, width = _make_layout(inlen)
    wslab = np.zeros((rows, width), np.float32)

    def put(name, arr):
        arr = np.asarray(arr, np.float32)
        r0 = offs[name]
        wslab[r0:r0 + arr.shape[0], :arr.shape[1]] = arr

    w0 = np.asarray(params["w0"], np.float32)   # (inlen, 2*inlen)
    w1 = np.asarray(params["w1"], np.float32)   # (18, inlen+3)
    w2 = np.asarray(params["w2"], np.float32)   # (18, 18)
    w3 = np.asarray(params["w3"], np.float32)   # (18, 18)
    w4 = np.asarray(params["w4"], np.float32)   # (1, 18)

    put("w0", _block_diag(w0.T, P))                             # (P*2*inlen, P*inlen)
    put("w1o", _block_diag(w1[:, :inlen].T, P))                 # (P*inlen, P*18)
    w1p = np.zeros((PW, 18), np.float32)
    w1p[:3, :] = w1[:, inlen:].T                                # rows: p1, p2, p3
    w1p[1, :] /= 50.0                                           # fold p2/50 into weight
    put("w1p", _block_diag(w1p, P))                             # (P*PW, P*18)
    put("w2", _block_diag(w2.T, P))
    put("w3", _block_diag(w3.T, P))
    put("w4", _block_diag(w4.T, P))                             # (P*18, P)

    bslab = np.zeros((8, width), np.float32)
    bslab[0, :P * inlen] = np.tile(np.asarray(params["b0"], np.float32), P)
    bslab[1, :P * 18] = np.tile(np.asarray(params["b1"], np.float32), P)
    bslab[2, :P * 18] = np.tile(np.asarray(params["b2"], np.float32), P)
    bslab[3, :P * 18] = np.tile(np.asarray(params["b3"], np.float32), P)
    bslab[4, :P] = np.tile(np.asarray(params["b4"], np.float32), P)

    return jnp.asarray(wslab, dtype=jnp.bfloat16), jnp.asarray(bslab)


def _make_kernel(inlen, offs):
    f32 = jnp.float32
    bf16 = jnp.bfloat16
    XW = P * 2 * inlen   # fc0 packed K  (256 for inlen=32)
    KP = P * PW          # p-path packed K (16)
    H0 = P * inlen       # fc0 packed N  (128)
    H1 = P * 18          # fc1-3 packed N (72)

    def kernel(xp_ref, w_ref, b_ref, out_ref):
        def w(name, rows, cols):
            r0 = offs[name]
            return w_ref[r0:r0 + rows, 0:cols]

        xw = xp_ref[:, 0:XW]              # (tb, P*2*inlen)  bf16
        pw = xp_ref[:, XW:XW + KP]        # (tb, P*PW)       bf16

        # fc0 : block-diagonal, P independent batch rows per vreg lane group
        out1 = jnp.tanh(
            jnp.dot(xw, w("w0", XW, H0), preferred_element_type=f32)
            + b_ref[0:1, 0:H0])

        # fc1 : out1-part + p-part (p2/50 already folded into the packed weight)
        out2 = jnp.tanh(
            jnp.dot(out1.astype(bf16), w("w1o", H0, H1), preferred_element_type=f32)
            + jnp.dot(pw, w("w1p", KP, H1), preferred_element_type=f32)
            + b_ref[1:2, 0:H1])

        out3 = jnp.tanh(
            jnp.dot(out2.astype(bf16), w("w2", H1, H1), preferred_element_type=f32)
            + b_ref[2:3, 0:H1])
        out4 = jnp.tanh(
            jnp.dot(out3.astype(bf16), w("w3", H1, H1), preferred_element_type=f32)
            + b_ref[3:4, 0:H1])

        # fc4 : block-diagonal (P*18, P) matmul -> lane-denser (tb, P) output
        out_ref[...] = (
            jnp.dot(out4.astype(bf16), w("w4", H1, P), preferred_element_type=f32)
            + b_ref[4:5, 0:P])

    return kernel


def net_forward(params, x, xx, p1, p2, p3, *, tile_rows=1024, packed=None):
    """Forward pass. `tile_rows` = packed rows per grid step (= P batch rows each)."""
    B, inlen = x.shape
    offs, wrows, wwidth = _make_layout(inlen)
    if packed is None:
        packed = pack_params(params, inlen)   # host-side; not jit-traceable
    wslab, bslab = packed

    # ---- batch tiling: pick tile, guarantee >=2 grid steps when enough work ----
    bq0 = _cdiv(B, P)                                   # packed rows of real data
    tb = min(tile_rows, _round_up(bq0, ALIGN))
    if bq0 > ALIGN:                                     # give v7x's 2 TCs separate steps
        tb = min(tb, _round_up(_cdiv(bq0, 2), ALIGN))
    tb = max(tb, ALIGN)
    grid_n = _cdiv(bq0, tb)
    bq = grid_n * tb
    bp = bq * P

    # ---- pack activations: batch-in-lanes, P rows per packed row ---------------
    xcat = jnp.concatenate([x, xx], axis=1).astype(jnp.float32)            # (B, 2*inlen)
    pvec = jnp.concatenate(
        [p1, p2, p3, jnp.zeros((B, PW - 3), jnp.float32)], axis=1
    ).astype(jnp.float32)                                                  # (B, PW)
    if bp != B:
        xcat = jnp.pad(xcat, ((0, bp - B), (0, 0)))
        pvec = jnp.pad(pvec, ((0, bp - B), (0, 0)))
    xq = xcat.reshape(bq, P * 2 * inlen)
    pq = pvec.reshape(bq, P * PW)
    xp = jnp.concatenate([xq, pq], axis=1).astype(jnp.bfloat16)            # (bq, 272)

    xw_tot = P * 2 * inlen + P * PW
    kernel = _make_kernel(inlen, offs)

    flops = 2 * bp * (2 * inlen * inlen + (inlen + 3) * 18 + 2 * 18 * 18 + 18)
    transcendentals = bp * (inlen + 3 * 18)
    bytes_accessed = bq * xw_tot * 2 + wrows * wwidth * 2 + 8 * wwidth * 4 + bq * P * 4

    out = pl.pallas_call(
        kernel,
        out_shape=jax.ShapeDtypeStruct((bq, P), jnp.float32),
        grid=(grid_n,),
        in_specs=[
            pl.BlockSpec((tb, xw_tot), lambda i: (i, 0)),      # activations, batch-tiled
            pl.BlockSpec((wrows, wwidth), lambda i: (0, 0)),   # bf16 weight slab, resident
            pl.BlockSpec((8, wwidth), lambda i: (0, 0)),       # f32 bias slab, resident
        ],
        out_specs=pl.BlockSpec((tb, P), lambda i: (i, 0)),
        compiler_params=pltpu.CompilerParams(
            dimension_semantics=("parallel",),   # shard batch grid across TCs (v7x)
            vmem_limit_bytes=32 << 20,           # safe on v5e/v6e/v7x; usage ~3 MiB
        ),
        cost_estimate=pl.CostEstimate(
            flops=flops,
            transcendentals=transcendentals,
            bytes_accessed=bytes_accessed,
        ),
    )(xp, wslab, bslab)

    out = out.reshape(bp, 1)[:B]
    # torch: out5.unsqueeze(dim=1) -> (B, 1, 1)
    return out[:, None, :]


def net_forward_ref(params, x, xx, p1, p2, p3):
    """Pure-JAX f32 reference matching the PyTorch forward exactly."""
    xcat = jnp.concatenate([x, xx], axis=1)
    out1 = jnp.tanh(xcat @ params["w0"].T + params["b0"])
    f1 = jnp.concatenate([out1, p1, p2 / 50.0, p3], axis=1)
    out2 = jnp.tanh(f1 @ params["w1"].T + params["b1"])
    out3 = jnp.tanh(out2 @ params["w2"].T + params["b2"])
    out4 = jnp.tanh(out3 @ params["w3"].T + params["b3"])
    out5 = out4 @ params["w4"].T + params["b4"]
    return out5[:, None, :]


if __name__ == "__main__":
    inlen = 32
    batch = 8

    key = jax.random.PRNGKey(0)
    kp, kx, kxx, k1, k2, k3 = jax.random.split(key, 6)

    params = init_params(kp, inlen)
    packed = pack_params(params, inlen)

    x = jax.random.normal(kx, (batch, inlen), jnp.float32)
    xx = jax.random.normal(kxx, (batch, inlen), jnp.float32)
    p1 = jax.random.normal(k1, (batch, 1), jnp.float32)
    p2 = jax.random.normal(k2, (batch, 1), jnp.float32) * 50.0
    p3 = jax.random.normal(k3, (batch, 1), jnp.float32)

    out = net_forward(params, x, xx, p1, p2, p3, packed=packed)
    out = jax.block_until_ready(out)

    ref = net_forward_ref(params, x, xx, p1, p2, p3)
    assert out.shape == (batch, 1, 1), out.shape
    # bf16 matmul operands -> loosen tolerance vs the f32 reference
    err = float(jnp.max(jnp.abs(out - ref)))
    assert err < 2.5e-2, f"mismatch vs reference, max abs err = {err}"

    print("KERNEL_OK")
</pallas_src>

<mosaic_0001>
module attributes {stable_mosaic.version = 11 : i64} {
  func.func @kernel(%arg0: i32, %arg1: memref<16x272xbf16, #tpu.memory_space<vmem>>, %arg2: memref<640x128xbf16, #tpu.memory_space<vmem>>, %arg3: memref<8x128xf32, #tpu.memory_space<vmem>>, %arg4: memref<16x4xf32, #tpu.memory_space<vmem>>) attributes {dimension_semantics = [#tpu.dimension_semantics<parallel>], iteration_bounds = array<i64: 1>, scalar_prefetch = 0 : i64, scratch_operands = 0 : i64, tpu.core_type = #tpu.core_type<tc>, window_params = [{transform_indices = @transform_0, window_bounds = array<i64: 16, 272>}, {pipeline_mode = #tpu.pipeline_mode<synchronous>, transform_indices = @transform_1, window_bounds = array<i64: 640, 128>}, {pipeline_mode = #tpu.pipeline_mode<synchronous>, transform_indices = @transform_2, window_bounds = array<i64: 8, 128>}, {transform_indices = @transform_3, window_bounds = array<i64: 16, 4>}]} {
    %c0 = arith.constant 0 : index
    %c0_0 = arith.constant 0 : index
    %0 = vector.load %arg1[%c0, %c0_0] : memref<16x272xbf16, #tpu.memory_space<vmem>>, vector<16x256xbf16>
    %c0_1 = arith.constant 0 : index
    %c256 = arith.constant 256 : index
    %1 = vector.load %arg1[%c0_1, %c256] : memref<16x272xbf16, #tpu.memory_space<vmem>>, vector<16x16xbf16>
    %c0_2 = arith.constant 0 : index
    %c0_3 = arith.constant 0 : index
    %2 = vector.load %arg2[%c0_2, %c0_3] : memref<640x128xbf16, #tpu.memory_space<vmem>>, vector<256x128xbf16>
    %cst = arith.constant dense<0.000000e+00> : vector<16x128xf32>
    %3 = tpu.matmul %0, %2, %cst {dimension_numbers = #tpu.dot_dimension_numbers<[1], [0], [0], [1], [0, 0, 1, 1], [], []>} : vector<16x256xbf16>, vector<256x128xbf16>, vector<16x128xf32> -> vector<16x128xf32>
    %c0_4 = arith.constant 0 : index
    %c0_5 = arith.constant 0 : index
    %4 = vector.load %arg3[%c0_4, %c0_5] : memref<8x128xf32, #tpu.memory_space<vmem>>, vector<1x128xf32>
    %5 = vector.broadcast %4 : vector<1x128xf32> to vector<16x128xf32>
    %6 = arith.addf %3, %5 : vector<16x128xf32>
    %7 = math.tanh %6 : vector<16x128xf32>
    %8 = arith.truncf %7 : vector<16x128xf32> to vector<16x128xbf16>
    %c256_6 = arith.constant 256 : index
    %c0_7 = arith.constant 0 : index
    %9 = vector.load %arg2[%c256_6, %c0_7] : memref<640x128xbf16, #tpu.memory_space<vmem>>, vector<128x72xbf16>
    %cst_8 = arith.constant dense<0.000000e+00> : vector<16x72xf32>
    %10 = tpu.matmul %8, %9, %cst_8 {dimension_numbers = #tpu.dot_dimension_numbers<[1], [0], [0], [1], [0, 0, 1, 1], [], []>} : vector<16x128xbf16>, vector<128x72xbf16>, vector<16x72xf32> -> vector<16x72xf32>
    %c384 = arith.constant 384 : index
    %c0_9 = arith.constant 0 : index
    %11 = vector.load %arg2[%c384, %c0_9] : memref<640x128xbf16, #tpu.memory_space<vmem>>, vector<16x72xbf16>
    %cst_10 = arith.constant dense<0.000000e+00> : vector<16x72xf32>
    %12 = tpu.matmul %1, %11, %cst_10 {dimension_numbers = #tpu.dot_dimension_numbers<[1], [0], [0], [1], [0, 0, 1, 1], [], []>} : vector<16x16xbf16>, vector<16x72xbf16>, vector<16x72xf32> -> vector<16x72xf32>
    %13 = arith.addf %10, %12 : vector<16x72xf32>
    %c1 = arith.constant 1 : index
    %c0_11 = arith.constant 0 : index
    %14 = vector.load %arg3[%c1, %c0_11] : memref<8x128xf32, #tpu.memory_space<vmem>>, vector<1x72xf32>
    %15 = vector.broadcast %14 : vector<1x72xf32> to vector<16x72xf32>
    %16 = arith.addf %13, %15 : vector<16x72xf32>
    %17 = math.tanh %16 : vector<16x72xf32>
    %18 = arith.truncf %17 : vector<16x72xf32> to vector<16x72xbf16>
    %c400 = arith.constant 400 : index
    %c0_12 = arith.constant 0 : index
    %19 = vector.load %arg2[%c400, %c0_12] : memref<640x128xbf16, #tpu.memory_space<vmem>>, vector<72x72xbf16>
    %cst_13 = arith.constant dense<0.000000e+00> : vector<16x72xf32>
    %20 = tpu.matmul %18, %19, %cst_13 {dimension_numbers = #tpu.dot_dimension_numbers<[1], [0], [0], [1], [0, 0, 1, 1], [], []>} : vector<16x72xbf16>, vector<72x72xbf16>, vector<16x72xf32> -> vector<16x72xf32>
    %c2 = arith.constant 2 : index
    %c0_14 = arith.constant 0 : index
    %21 = vector.load %arg3[%c2, %c0_14] : memref<8x128xf32, #tpu.memory_space<vmem>>, vector<1x72xf32>
    %22 = vector.broadcast %21 : vector<1x72xf32> to vector<16x72xf32>
    %23 = arith.addf %20, %22 : vector<16x72xf32>
    %24 = math.tanh %23 : vector<16x72xf32>
    %25 = arith.truncf %24 : vector<16x72xf32> to vector<16x72xbf16>
    %c480 = arith.constant 480 : index
    %c0_15 = arith.constant 0 : index
    %26 = vector.load %arg2[%c480, %c0_15] : memref<640x128xbf16, #tpu.memory_space<vmem>>, vector<72x72xbf16>
    %cst_16 = arith.constant dense<0.000000e+00> : vector<16x72xf32>
    %27 = tpu.matmul %25, %26, %cst_16 {dimension_numbers = #tpu.dot_dimension_numbers<[1], [0], [0], [1], [0, 0, 1, 1], [], []>} : vector<16x72xbf16>, vector<72x72xbf16>, vector<16x72xf32> -> vector<16x72xf32>
    %c3 = arith.constant 3 : index
    %c0_17 = arith.constant 0 : index
    %28 = vector.load %arg3[%c3, %c0_17] : memref<8x128xf32, #tpu.memory_space<vmem>>, vector<1x72xf32>
    %29 = vector.broadcast %28 : vector<1x72xf32> to vector<16x72xf32>
    %30 = arith.addf %27, %29 : vector<16x72xf32>
    %31 = math.tanh %30 : vector<16x72xf32>
    %32 = arith.truncf %31 : vector<16x72xf32> to vector<16x72xbf16>
    %c560 = arith.constant 560 : index
    %c0_18 = arith.constant 0 : index
    %33 = vector.load %arg2[%c560, %c0_18] : memref<640x128xbf16, #tpu.memory_space<vmem>>, vector<72x4xbf16>
    %cst_19 = arith.constant dense<0.000000e+00> : vector<16x4xf32>
    %34 = tpu.matmul %32, %33, %cst_19 {dimension_numbers = #tpu.dot_dimension_numbers<[1], [0], [0], [1], [0, 0, 1, 1], [], []>} : vector<16x72xbf16>, vector<72x4xbf16>, vector<16x4xf32> -> vector<16x4xf32>
    %c4 = arith.constant 4 : index
    %c0_20 = arith.constant 0 : index
    %35 = vector.load %arg3[%c4, %c0_20] : memref<8x128xf32, #tpu.memory_space<vmem>>, vector<1x4xf32>
    %36 = vector.broadcast %35 : vector<1x4xf32> to vector<16x4xf32>
    %37 = arith.addf %34, %36 : vector<16x4xf32>
    %c0_21 = arith.constant 0 : index
    %c0_22 = arith.constant 0 : index
    %38 = vector.load %arg4[%c0_21, %c0_22] : memref<16x4xf32, #tpu.memory_space<vmem>>, vector<16x4xf32>
    tpu.vector_store %arg4[%c0_21, %c0_22], %37 {strides = array<i32>} : memref<16x4xf32, #tpu.memory_space<vmem>>, vector<16x4xf32>,
    return
  }
  func.func @transform_0(%arg0: i32) -> (i32, i32) {
    %c0_i32 = arith.constant 0 : i32
    %c0_i32_0 = arith.constant 0 : i32
    return %arg0, %c0_i32 : i32, i32
  }
  func.func @transform_1(%arg0: i32) -> (i32, i32) {
    %c0_i32 = arith.constant 0 : i32
    %c0_i32_0 = arith.constant 0 : i32
    %c0_i32_1 = arith.constant 0 : i32
    return %c0_i32, %c0_i32_0 : i32, i32
  }
  func.func @transform_2(%arg0: i32) -> (i32, i32) {
    %c0_i32 = arith.constant 0 : i32
    %c0_i32_0 = arith.constant 0 : i32
    %c0_i32_1 = arith.constant 0 : i32
    return %c0_i32, %c0_i32_0 : i32, i32
  }
  func.func @transform_3(%arg0: i32) -> (i32, i32) {
    %c0_i32 = arith.constant 0 : i32
    %c0_i32_0 = arith.constant 0 : i32
    return %arg0, %c0_i32 : i32, i32
  }
}

</mosaic_0001>

<bundles_post_ra>
// kernel: tpu_custom_call.1
= control target key start
LH: loop header
LB: loop body
LE: loop exit
PB: predicated region body
PF: predicated region fallthrough
CT: control target
= control target key end

     0   :  { %8 = vsyncpa [#allocation3], 0  ;;  %s1120_s0 = inlined_call_operand.hbm [shape: bf16[16,272], index: 0, kind: input, shape index: {}]   ;;  %s1121_s1 = inlined_call_operand.hbm [shape: bf16[640,128], index: 1, kind: input, shape index: {}]   ;;  %s1122_s2 = inlined_call_operand.hbm [shape: f32[8,128], index: 2, kind: input, shape index: {}]   ;;  %s1123_s3 = inlined_call_operand.vmem [shape: f32[16,4], index: 3, kind: output, shape index: {}]  }
   0x1   :  { %9 = vsyncpa [#allocation5], 0  ;;  %s1009_s12 = smov [#allocation4]   ;;  %s939_s16 = scalar_lea.hbm %s1121_s1, 5120 }
   0x2   :  { %s27_s13 = sshll.u32 %s1009_s12, 4  ;;  %p940_p0 = scmp.ne.s32.totalorder %s1121_s1, %s939_s16  ;;  %s28_s13 = int_to_ptr.vmem [resolvable:$true] %s27_s13 }
   0x3   :  { %p943_p1 = scmp.lt.u32.totalorder %s939_s16, %s1121_s1 }
   0x5   :  { %p945_p2 = pnand %p943_p1, %p940_p0 }
   0x7   :  { %948 = shalt.err (!%p945_p2)
}
   0x8   :  { %s949_s21 = scalar_lea.vmem %s28_s13, 5120  ;;  %p954_p4 = scmp.lt.s32.totalorder %s28_s13, %s28_s13 }
   0x9   :  { %p950_p3 = scmp.ne.s32.totalorder %s28_s13, %s949_s21  ;;  %p955_p5 = scmp.lt.s32.totalorder %s949_s21, %s949_s21 }
   0xb   :  { %p956_p6 = por %p955_p5, %p954_p4 }
   0xd   :  { %p957_p7 = pnand %p956_p6, %p950_p3 }
   0xf   :  { %960 = shalt.err (!%p957_p7)
}
  0x10   :  { %s1010_s22 = smov 64   ;;  %s1011_s23 = smov 4  }
  0x11   :  { %33 = dma.hbm_to_vmem [thread:$0]  %s1121_s1, 5120, %s28_s13, [#allocation5], %s1010_s22, %s1010_s22, %s1011_s23  }
  0x12   :  { %s1012_s26 = smov [#allocation2]   ;;  %s961_s30 = scalar_lea.hbm %s1120_s0, 384 }
  0x13   :  { %s15_s27 = sshll.u32 %s1012_s26, 4  ;;  %p962_p8 = scmp.ne.s32.totalorder %s1120_s0, %s961_s30  ;;  %s16_s27 = int_to_ptr.vmem [resolvable:$true] %s15_s27 }
  0x14   :  { %p965_p9 = scmp.lt.u32.totalorder %s961_s30, %s1120_s0 }
  0x16   :  { %p967_p10 = pnand %p965_p9, %p962_p8 }
  0x18   :  { %970 = shalt.err (!%p967_p10)
}
  0x19   :  { %s971_s8 = scalar_lea.vmem %s16_s27, 384  ;;  %p976_p12 = scmp.lt.s32.totalorder %s16_s27, %s16_s27 }
  0x1a   :  { %p972_p11 = scmp.ne.s32.totalorder %s16_s27, %s971_s8  ;;  %p977_p13 = scmp.lt.s32.totalorder %s971_s8, %s971_s8 }
  0x1c   :  { %p978_p0 = por %p977_p13, %p976_p12 }
  0x1e   :  { %p979_p1 = pnand %p978_p0, %p972_p11 }
  0x20   :  { %982 = shalt.err (!%p979_p1)
}
  0x21   :  { %s1013_s1 = smov 192   ;;  %s1014_s9 = smov 12  }
  0x22   :  { %21 = dma.hbm_to_vmem [thread:$0]  %s1120_s0, 384, %s16_s27, [#allocation3], %s1013_s1, %s1013_s1, %s1014_s9  }
  0x23   :  { %s1015_s12 = smov [#allocation6]   ;;  %s983_s16 = scalar_lea.hbm %s1122_s2, 128 }
  0x24   :  { %s40_s13 = sshll.u32 %s1015_s12, 4  ;;  %p984_p2 = scmp.ne.s32.totalorder %s1122_s2, %s983_s16  ;;  %s41_s13 = int_to_ptr.vmem [resolvable:$true] %s40_s13 }
  0x25   :  { %p987_p3 = scmp.lt.u32.totalorder %s983_s16, %s1122_s2 }
  0x27   :  { %p989_p4 = pnand %p987_p3, %p984_p2 }
  0x29   :  { %992 = shalt.err (!%p989_p4)
}
  0x2a   :  { %s993_s21 = scalar_lea.vmem %s41_s13, 128  ;;  %p998_p6 = scmp.lt.s32.totalorder %s41_s13, %s41_s13 }
  0x2b   :  { %p994_p5 = scmp.ne.s32.totalorder %s41_s13, %s993_s21  ;;  %p999_p7 = scmp.lt.s32.totalorder %s993_s21, %s993_s21 }
  0x2d   :  { %p1000_p8 = por %p999_p7, %p998_p6 }
  0x2f   :  { %p1001_p9 = pnand %p1000_p8, %p994_p5 }
  0x31   :  { %1004 = shalt.err (!%p1001_p9)
}
  0x32   :  { %43 = dma.hbm_to_vmem [thread:$0]  %s1122_s2, 128, %s41_s13, [#allocation5]  }
  0x33   :  { %1005 = dma.done.wait [#allocation3], 384  }
  0x34   :  { %1006 = vsyncadd [#allocation3], 4294966912 }
  0x35   :  { %1007 = dma.done.wait [#allocation5], 5248  }
  0x36   :  { %1008 = vsyncadd [#allocation5], 4294962048  ;;  %v1016_v0 = vmov 0.0   ;;  %vm1017_vm0 = vmmov 0   ;;  %v879_v1 = vld [vmem:[#allocation4 + $0x40] sm:$0xff]   ;;  %v881_v3 = vld [vmem:[#allocation4 + $0x48] sm:$0xff]  }
  0x37   :  { %802 = vmatprep.subr.bf16.mxu1 %v1016_v0  ;;  %804 = vmatprep.mubr.msk.bf16.mxu1 %vm1017_vm0, %v1016_v0  ;;  %v880_v2 = vld [vmem:[#allocation4] sm:$0xff]   ;;  %v882_v4 = vld [vmem:[#allocation4 + $0x8] sm:$0xff]   ;;  %v883_v5 = vld [vmem:[#allocation4 + $0x50] sm:$0xff]   ;;  %vm274_vm1 = vcmask 130048   ;;  %vm463_vm2 = vcmask 1043456   ;;  %vm459_vm3 = vcmask 588800  }
  0x38   :  { %751 = vmatprep.subr.bf16.mxu0 %v879_v1  ;;  %v884_v6 = vld [vmem:[#allocation4 + $0x10] sm:$0xff]   ;;  %v885_v7 = vld [vmem:[#allocation4 + $0x58] sm:$0xff]   ;;  %v887_v9 = vld [vmem:[#allocation4 + $0x60] sm:$0xff]   ;;  %vm690_vm4 = vcmask 31744  }
  0x39   :  { %752 = vmatpush3.bf16.msra.mxu0 %v880_v2  ;;  %v886_v8 = vld [vmem:[#allocation4 + $0x18] sm:$0xff]   ;;  %v888_v10 = vld [vmem:[#allocation4 + $0x20] sm:$0xff]   ;;  %v889_v11 = vld [vmem:[#allocation4 + $0x68] sm:$0xff]  }
  0x3a   :  { %753 = vmatprep.subr.bf16.mxu0 %v881_v3  ;;  %v890_v12 = vld [vmem:[#allocation4 + $0x28] sm:$0xff]   ;;  %v891_v14 = vld [vmem:[#allocation4 + $0x70] sm:$0xff]   ;;  %v898_v15 = vld [vmem:[#allocation4 + $0xc0] sm:$0xff]  }
  0x3b   :  { %v897_v13 = vld [vmem:[#allocation2 + $0x4] ss:$12 sps:$4 sm:$0xff]   ;;  %v899_v16 = vld [vmem:[#allocation2 + $0x8] ss:$12 sps:$4 sm:$0xff]   ;;  %803 = vmatpush3.bf16.msra.mxu1 %v898_v15  ;;  %v900_v17 = vld [vmem:[#allocation4 + $0x80] sm:$0xff]  }
  0x3c   :  { %233 = vmatprep.mubr.bf16.mxu0 %v897_v13  ;;  %v892_v18 = vld [vmem:[#allocation4 + $0x30] sm:$0xff]   ;;  %808 = vmatprep.subr.bf16.mxu1 %v1016_v0  ;;  %v893_v19 = vld [vmem:[#allocation4 + $0x78] sm:$0xff]   ;;  %v901_v20 = vld [vmem:[#allocation4 + $0x88] sm:$0xff]  }
  0x3d   :  { %754 = vmatpush3.bf16.msra.mxu0 %v882_v4  ;;  %v894_v21 = vld [vmem:[#allocation4 + $0x38] sm:$0xff]   ;;  %v902_v22 = vld [vmem:[#allocation4 + $0x90] sm:$0xff]   ;;  %v904_v25 = vld [vmem:[#allocation4 + $0xa0] sm:$0xff]  }
  0x3e   :  { %755 = vmatprep.subr.bf16.mxu0 %v883_v5  ;;  %805 = vmatmul.mubr.msk.bf16.vlgmr.msra.gmra.mrb[0].mxu1 %vm274_vm1, %v899_v16  ;;  %v895_v23 = vld [vmem:[#allocation2] ss:$12 sps:$4 sm:$0xff]   ;;  %v903_v24 = vld [vmem:[#allocation4 + $0x98] sm:$0xff]   ;;  %v699_v34 = vld [vmem:[#allocation6] ss:$0 sm:$0xff] }
  0x3f   :  { %809 = vmatpush3.bf16.msra.mxu1 %v900_v17  ;;  %824 = vmatprep.mubr.msk.bf16.mxu1 %vm1017_vm0, %v1016_v0  ;;  %v905_v26 = vld [vmem:[#allocation4 + $0xa8] sm:$0xff]   ;;  %v906_v27 = vld [vmem:[#allocation4 + $0xb0] sm:$0xff]   ;;  %v907_v28 = vld [vmem:[#allocation4 + $0xb8] sm:$0xff]  }
  0x40   :  { %810 = vmatprep.subr.bf16.mxu1 %v1016_v0  ;;  %v908_v45 = vld [vmem:[#allocation4 + $0xc8] sm:$0xff]   ;;  %v909_v46 = vld [vmem:[#allocation4 + $0xd0] sm:$0xff]   ;;  %v910_v47 = vld [vmem:[#allocation4 + $0xd8] sm:$0xff]  }
  0x41   :  { %756 = vmatpush3.bf16.msra.mxu0 %v884_v6  ;;  %v911_v48 = vld [vmem:[#allocation4 + $0xe0] sm:$0xff]   ;;  %v912_v49 = vld [vmem:[#allocation4 + $0xe8] ss:$0 sps:$4 sm:$0xff]   ;;  %v913_v51 = vld [vmem:[#allocation4 + $0xf0] sm:$0xff]  }
  0x42   :  { %757 = vmatprep.subr.bf16.mxu0 %v885_v7  ;;  %v465_v50 = vsel %vm463_vm2, %v912_v49, 0  ;;  %v729_v53 = vld [vmem:[#allocation6 + $0x1] ss:$0 sm:$0xff]  ;;  %v914_v1 = vld [vmem:[#allocation4 + $0xf8] sm:$0xff]   ;;  %v916_v3 = vld [vmem:[#allocation4 + $0x108] sm:$0xff]  }
  0x43   :  { %811 = vmatpush3.bf16.msra.mxu1 %v901_v20  ;;  %v915_v2 = vld [vmem:[#allocation4 + $0x100] sm:$0xff]   ;;  %v917_v4 = vld [vmem:[#allocation4 + $0x110] ss:$0 sps:$4 sm:$0xff]   ;;  %v918_v6 = vld [vmem:[#allocation4 + $0x118] sm:$0xff]  }
  0x44   :  { %812 = vmatprep.subr.bf16.mxu1 %v1016_v0  ;;  %v556_v5 = vsel %vm463_vm2, %v917_v4, 0  ;;  %v730_v7 = vld [vmem:[#allocation6 + $0x2] ss:$0 sm:$0xff]  ;;  %v922_v20 = vld [vmem:[#allocation4 + $0x138] ss:$0 sps:$4 sm:$0xff]  }
  0x45   :  { %758 = vmatpush3.bf16.msra.mxu0 %v886_v8  ;;  %v919_v17 = vld [vmem:[#allocation4 + $0x120] sm:$0xff]  }
  0x46   :  { %759 = vmatprep.subr.bf16.mxu0 %v887_v9 }
  0x47   :  { %813 = vmatpush3.bf16.msra.mxu1 %v902_v22  ;;  %v737_v22 = vld [vmem:[#allocation6 + $0x3] ss:$0 sm:$0xff] }
  0x48   :  { %814 = vmatprep.subr.bf16.mxu1 %v1016_v0 }
  0x49   :  { %760 = vmatpush3.bf16.msra.mxu0 %v888_v10 }
  0x4a   :  { %761 = vmatprep.subr.bf16.mxu0 %v889_v11 }
  0x4b   :  { %815 = vmatpush3.bf16.msra.mxu1 %v903_v24 }
  0x4c   :  { %816 = vmatprep.subr.bf16.mxu1 %v1016_v0 }
  0x4d   :  { %762 = vmatpush3.bf16.msra.mxu0 %v890_v12 }
  0x4e   :  { %763 = vmatprep.subr.bf16.mxu0 %v891_v14 }
  0x4f   :  { %817 = vmatpush3.bf16.msra.mxu1 %v904_v25 }
  0x50   :  { %818 = vmatprep.subr.bf16.mxu1 %v1016_v0 }
  0x51   :  { %764 = vmatpush3.bf16.msra.mxu0 %v892_v18  ;;  %v920_v18 = vld [vmem:[#allocation4 + $0x128] sm:$0xff]  }
  0x52   :  { %765 = vmatprep.subr.bf16.mxu0 %v893_v19  ;;  %v921_v19 = vld [vmem:[#allocation4 + $0x130] sm:$0xff]  }
  0x53   :  { %819 = vmatpush3.bf16.msra.mxu1 %v905_v26 }
  0x54   :  { %820 = vmatprep.subr.bf16.mxu1 %v1016_v0 }
  0x55   :  { %766 = vmatpush3.bf16.msra.mxu0 %v894_v21  ;;  %v647_v21 = vsel %vm463_vm2, %v922_v20, 0 }
  0x56   :  { %828 = vmatprep.subr.bf16.mxu0 %v1016_v0 }
  0x57   :  { %821 = vmatpush3.bf16.msra.mxu1 %v906_v27 }
  0x58   :  { %234 = vmatmul.mubr.bf16.vlgmr.msra.gmra.mrb[0].mxu0 %v895_v23  ;;  %822 = vmatprep.subr.bf16.mxu1 %v1016_v0 }
  0x59   :  { %838 = vmatprep.mubr.msk.bf16.mxu0 %vm1017_vm0, %v1016_v0  ;;  %829 = vmatpush3.bf16.msra.mxu0 %v908_v45 }
  0x5a   :  { %830 = vmatprep.subr.bf16.mxu0 %v1016_v0 }
  0x5b   :  { %823 = vmatpush3.bf16.msra.mxu1 %v907_v28 }
  0x5c   :  { %842 = vmatprep.subr.bf16.mxu1 %v1016_v0 }
  0x5d   :  { %831 = vmatpush3.bf16.msra.mxu0 %v909_v46 }
  0x5e   :  { %832 = vmatprep.subr.bf16.mxu0 %v1016_v0 }
  0x61   :  { %833 = vmatpush3.bf16.msra.mxu0 %v910_v47 }
  0x62   :  { %834 = vmatprep.subr.bf16.mxu0 %v1016_v0 }
  0x65   :  { %835 = vmatpush3.bf16.msra.mxu0 %v911_v48 }
  0x66   :  { %836 = vmatprep.subr.bf16.mxu0 %v1016_v0 }
  0x69   :  { %837 = vmatpush3.bf16.msra.mxu0 %v465_v50 }
  0x6a   :  { %856 = vmatprep.subr.bf16.mxu0 %v1016_v0 }
 0x111   :  { %v312_v29 = vpop.f32.mrb[0].mxu1 }
 0x112   :  { %v806_v30 = vpop.f32.mrb[1].mxu1 }
 0x113   :  { %v315_v31 = vpop.f32.mrb[2].mxu1 }
 0x114   :  { %v807_v32 = vpop.f32.mrb[3].mxu1 }
 0x115   :  { %v744_v32 = vld [vmem:[#allocation6 + $0x4] ss:$0 sm:$0xff] }
 0x12b   :  { %v767_v33 = vpop.f32.mrb[0].mxu0 }
 0x12c   :  { %v768_v35 = vpop.f32.mrb[1].mxu0 }
 0x12d   :  { %v769_v36 = vadd.f32 %v768_v35, %v767_v33  ;;  %v770_v37 = vpop.f32.mrb[2].mxu0 }
 0x12e   :  { %v771_v38 = vpop.f32.mrb[3].mxu0 }
 0x12f   :  { %v236_v39 = vadd.f32 %v769_v36, %v699_v34  ;;  %v772_v40 = vadd.f32 %v771_v38, %v770_v37 }
 0x131   :  { %v239_v41 = vadd.f32 %v772_v40, %v699_v34  ;;  %923 = vtanh.f32 %v236_v39 }
 0x133   :  { %925 = vtanh.f32 %v239_v41 }
 0x13b   :  { %v924_v42 = vpop.eup %923 }
 0x13d   :  { %v926_v43 = vpop.eup %925 }
 0x13e   :  { %v244_v44 = vpack.c.bf16 %v926_v43, %v924_v42 }
 0x140   :  { %825 = vmatmul.mubr.bf16.vlgmr.msra.gmra.mrb[4].mxu1 %v244_v44 }
 0x141   :  { %852 = vmatprep.mubr.msk.bf16.mxu1 %vm1017_vm0, %v1016_v0  ;;  %843 = vmatpush3.bf16.msra.mxu1 %v913_v51 }
 0x142   :  { %844 = vmatprep.subr.bf16.mxu1 %v1016_v0 }
 0x145   :  { %845 = vmatpush3.bf16.msra.mxu1 %v914_v1 }
 0x146   :  { %846 = vmatprep.subr.bf16.mxu1 %v1016_v0 }
 0x149   :  { %847 = vmatpush3.bf16.msra.mxu1 %v915_v2 }
 0x14a   :  { %848 = vmatprep.subr.bf16.mxu1 %v1016_v0 }
 0x14d   :  { %849 = vmatpush3.bf16.msra.mxu1 %v916_v3 }
 0x14e   :  { %850 = vmatprep.subr.bf16.mxu1 %v1016_v0 }
 0x151   :  { %851 = vmatpush3.bf16.msra.mxu1 %v556_v5 }
 0x213   :  { %v401_v52 = vpop.f32.mrb[4].mxu1 }
 0x214   :  { %v402_v54 = vadd.f32 %v401_v52, %v312_v29  ;;  %v826_v55 = vpop.f32.mrb[5].mxu1 }
 0x215   :  { %v404_v56 = vpop.f32.mrb[6].mxu1 }
 0x216   :  { %v413_v57 = vadd.f32 %v729_v53, %v402_v54  ;;  %v405_v58 = vadd.f32 %v404_v56, %v315_v31  ;;  %v827_v59 = vpop.f32.mrb[7].mxu1 }
 0x218   :  { %v414_v60 = vadd.f32 %v729_v53, %v405_v58  ;;  %927 = vtanh.f32 %v413_v57 }
 0x21a   :  { %929 = vtanh.f32 %v414_v60 }
 0x222   :  { %v928_v61 = vpop.eup %927 }
 0x224   :  { %v930_v62 = vpop.eup %929 }
 0x225   :  { %v417_v63 = vpack.c.bf16 %v930_v62, %v928_v61 }
 0x227   :  { %839 = vmatmul.mubr.msk.bf16.vlgmr.msra.gmra.mrb[4].mxu0 %vm459_vm3, %v417_v63 }
 0x228   :  { %866 = vmatprep.mubr.msk.bf16.mxu0 %vm1017_vm0, %v1016_v0  ;;  %857 = vmatpush3.bf16.msra.mxu0 %v918_v6 }
 0x229   :  { %858 = vmatprep.subr.bf16.mxu0 %v1016_v0 }
 0x22c   :  { %859 = vmatpush3.bf16.msra.mxu0 %v919_v17 }
 0x22d   :  { %860 = vmatprep.subr.bf16.mxu0 %v1016_v0 }
 0x230   :  { %861 = vmatpush3.bf16.msra.mxu0 %v920_v18 }
 0x231   :  { %862 = vmatprep.subr.bf16.mxu0 %v1016_v0 }
 0x234   :  { %863 = vmatpush3.bf16.msra.mxu0 %v921_v19 }
 0x235   :  { %864 = vmatprep.subr.bf16.mxu0 %v1016_v0 }
 0x238   :  { %865 = vmatpush3.bf16.msra.mxu0 %v647_v21 }
 0x2fa   :  { %v501_v8 = vpop.f32.mrb[4].mxu0 }
 0x2fb   :  { %v502_v9 = vadd.f32 %v730_v7, %v501_v8  ;;  %v840_v10 = vpop.f32.mrb[5].mxu0 }
 0x2fc   :  { %v504_v11 = vpop.f32.mrb[6].mxu0 }
 0x2fd   :  { %v505_v12 = vadd.f32 %v730_v7, %v504_v11  ;;  %v841_v13 = vpop.f32.mrb[7].mxu0  ;;  %931 = vtanh.f32 %v502_v9 }
 0x2ff   :  { %933 = vtanh.f32 %v505_v12 }
 0x307   :  { %v932_v14 = vpop.eup %931 }
 0x309   :  { %v934_v15 = vpop.eup %933 }
 0x30a   :  { %v510_v16 = vpack.c.bf16 %v934_v15, %v932_v14 }
 0x30c   :  { %853 = vmatmul.mubr.msk.bf16.vlgmr.msra.gmra.mrb[8].mxu1 %vm459_vm3, %v510_v16 }
 0x3df   :  { %v592_v23 = vpop.f32.mrb[8].mxu1 }
 0x3e0   :  { %v593_v24 = vadd.f32 %v737_v22, %v592_v23  ;;  %v854_v25 = vpop.f32.mrb[9].mxu1 }
 0x3e1   :  { %v595_v26 = vpop.f32.mrb[10].mxu1 }
 0x3e2   :  { %v596_v27 = vadd.f32 %v737_v22, %v595_v26  ;;  %v855_v28 = vpop.f32.mrb[11].mxu1  ;;  %935 = vtanh.f32 %v593_v24 }
 0x3e4   :  { %937 = vtanh.f32 %v596_v27 }
 0x3ec   :  { %v936_v29 = vpop.eup %935 }
 0x3ee   :  { %v938_v30 = vpop.eup %937 }
 0x3ef   :  { %v601_v31 = vpack.c.bf16 %v938_v30, %v936_v29 }
 0x3f1   :  { %867 = vmatmul.mubr.msk.bf16.vlgmr.msra.gmra.mrb[8].mxu0 %vm459_vm3, %v601_v31 }
 0x4c4   :  { %v683_v33 = vpop.f32.mrb[8].mxu0 }
 0x4c5   :  { %v684_v0 = vadd.f32 %v744_v32, %v683_v33  ;;  %v868_v34 = vpop.f32.mrb[9].mxu0 }
 0x4c6   :  { %v686_v35 = vpop.f32.mrb[10].mxu0 }
 0x4c7   :  { %691 = vst.msk [vmem:[%s1123_s3] sm:$0xff] %vm690_vm4, %v684_v0  ;;  %v687_v36 = vadd.f32 %v744_v32, %v686_v35  ;;  %v869_v37 = vpop.f32.mrb[11].mxu0 }
 0x4c9   :  { %692 = vst.msk [vmem:[%s1123_s3 + $0x8] sm:$0xff] %vm690_vm4, %v687_v36 }
 0x4ca   :  { %697 = vsyncpa [#allocation3], 1 }
 0x4cb   :  { %698 = vsyncpa [#allocation5], 1 }

</bundles_post_ra>
